<compile_context>
chip_gen: v5e
topology: v5e:2x2
jax: 0.10.0
libtpu: 0.0.40
codegen_flags: <defaults>
</compile_context>

<pallas_src>
from functools import partial

import jax
import jax.numpy as jnp
from jax.experimental import pallas as pl
from jax.experimental.pallas import tpu as pltpu


def _center_kernel(x_ref, m_ref, o_ref):
    # x_ref / o_ref: (block_rows, lane_chunk) VMEM tiles
    # m_ref:         (block_rows, 1)          per-row channel means (broadcast sub)
    o_ref[...] = x_ref[...] - m_ref[...]


def _tpu_params():
    """Return (num_tensorcores, default target block bytes, vmem_limit_bytes or None)."""
    kind = ""
    try:
        kind = jax.devices()[0].device_kind.lower()
    except Exception:
        pass
    if "v7" in kind or "tpu7" in kind:
        # 2 TCs/chip, 64 MiB physical VMEM: bigger blocks + explicit scoped limit.
        return 2, 6 * 1024 * 1024, 48 * 1024 * 1024
    if "v6" in kind:
        # 1 TC, 32 MiB scoped default (128 MiB physical): 4 MiB blocks are free headroom.
        return 1, 4 * 1024 * 1024, None
    # v5e and unknown parts: 16 MiB scoped default -> keep blocks <= ~2 MiB
    # (double-buffered in+out = 4x block = 8 MiB) without touching the limit.
    return 1, 2 * 1024 * 1024, None


def _pick_lane_chunk(lanes: int, max_chunk: int) -> int:
    """Largest multiple of 128 <= max_chunk, preferring one that divides `lanes` so
    only (at most) one tail chunk per row-block needs masked stores."""
    max_chunk = max(128, (max_chunk // 128) * 128)
    if lanes % 128 == 0:
        q = lanes // 128
        best = 0
        d = 1
        while d * d <= q:
            if q % d == 0:
                for dd in (d, q // d):
                    if dd * 128 <= max_chunk and dd * 128 > best:
                        best = dd * 128
            d += 1
        if best:
            return best
    # lanes not 128-aligned (e.g. 227x227): fixed 128-multiple chunks, one masked tail.
    return min(max_chunk, ((lanes + 127) // 128) * 128)


def _choose_blocks(rows: int, lanes: int, itemsize: int,
                   target_bytes: int, num_cores: int):
    """Pick (block_rows, lane_chunk) targeting ~target_bytes per block."""
    min_rows = rows if rows <= 8 else 8

    if min_rows * lanes * itemsize <= target_bytes or lanes <= 128:
        # Full-extent lane axis (fully unmasked stores); size the row slab.
        lane_chunk = lanes
        if rows <= 8:
            block_rows = rows
        else:
            block_rows = max(8, ((target_bytes // max(1, lanes * itemsize)) // 8) * 8)
            if block_rows >= rows:
                block_rows = rows
    else:
        # Large images: pin rows at the minimum sublane slab and chunk the lane axis
        # so the block footprint is bounded regardless of H*W.
        block_rows = min_rows
        max_chunk = max(128, target_bytes // (block_rows * itemsize))
        lane_chunk = _pick_lane_chunk(lanes, max_chunk)

    # 2-TensorCore parts (v7x): ensure enough grid steps for megacore sharding AND
    # >=2-3 pipelined steps per core. Single-TC parts run the grid serially, so
    # splitting an already-fitting block there only adds ~0.35 us/step overhead.
    if num_cores >= 2 and rows > 8:
        row_blocks = -(-rows // block_rows)
        lane_blocks = -(-lanes // lane_chunk)
        desired = 3 * num_cores
        if row_blocks * lane_blocks < desired:
            needed_row_blocks = -(-desired // lane_blocks)
            nb = max(8, ((-(-rows // needed_row_blocks) + 7) // 8) * 8)
            if nb < block_rows:
                block_rows = nb

    return block_rows, lane_chunk


@partial(jax.jit, static_argnames=("target_block_bytes", "donate_x"))
def input_center_layer(
    x: jax.Array,
    means: jax.Array,
    *,
    target_block_bytes: int | None = None,
    donate_x: bool = False,
) -> jax.Array:
    """Subtract per-channel means from an NCHW batch of images (InputCenterLayer)."""
    n, c, h, w = x.shape
    assert means.shape == (c,)
    # Subtract in the input dtype (matches the PyTorch broadcast; keeps HBM traffic
    # at the input width).
    means = means.astype(x.dtype)

    rows = n * c
    lanes = h * w
    itemsize = jnp.dtype(x.dtype).itemsize
    x2 = x.reshape(rows, lanes)

    # Per-row mean column: row r = (batch nb, channel cc) -> means[r % C].
    # (Kept inside the jit so XLA folds it; negligible N*C*itemsize bytes.)
    means_col = jnp.tile(means, n).reshape(rows, 1)

    num_cores, default_target, vmem_limit = _tpu_params()
    if target_block_bytes is None:
        target_block_bytes = default_target

    block_rows, lane_chunk = _choose_blocks(
        rows, lanes, itemsize, target_block_bytes, num_cores)
    grid = (pl.cdiv(rows, block_rows), pl.cdiv(lanes, lane_chunk))

    out2 = pl.pallas_call(
        _center_kernel,
        out_shape=jax.ShapeDtypeStruct((rows, lanes), x.dtype),
        grid=grid,
        in_specs=[
            pl.BlockSpec((block_rows, lane_chunk), lambda i, j: (i, j)),
            # Means block index is constant along the innermost (lane) axis, so
            # Pallas skips re-fetching it on inner grid steps.
            pl.BlockSpec((block_rows, 1), lambda i, j: (i, 0)),
        ],
        out_specs=pl.BlockSpec((block_rows, lane_chunk), lambda i, j: (i, j)),
        compiler_params=pltpu.CompilerParams(
            dimension_semantics=("parallel", "parallel"),
            vmem_limit_bytes=vmem_limit,
        ),
        # Pure read-modify-write: aliasing x -> out avoids a second N*C*H*W HBM
        # buffer when the caller can donate x.
        input_output_aliases=({0: 0} if donate_x else {}),
    )(x2, means_col)

    return out2.reshape(n, c, h, w)


if __name__ == "__main__":
    key = jax.random.PRNGKey(0)
    batch, channels, height, width = 2, 4, 16, 16

    # Deterministic "dataset means" (stand-in for e.g. CIFAR channel means).
    means = jnp.array([0.4914, 0.4822, 0.4465, 0.5000], dtype=jnp.float32)[:channels]
    x = jax.random.uniform(key, (batch, channels, height, width), dtype=jnp.float32)

    out = jax.block_until_ready(input_center_layer(x, means))
    ref = x - means.reshape(1, channels, 1, 1)
    assert out.shape == x.shape and out.dtype == x.dtype
    assert jnp.allclose(out, ref, atol=1e-6), "mismatch vs reference (small case)"

    # Also exercise the lane-chunked 2-D grid path (non-128-multiple spatial size,
    # tiny block budget -> masked tail chunk) to validate the tiling logic.
    x_big = jax.random.normal(jax.random.PRNGKey(1), (2, 3, 48, 69), dtype=jnp.float32)
    m_big = jnp.array([0.1, -0.2, 0.3], dtype=jnp.float32)
    out_big = jax.block_until_ready(
        input_center_layer(x_big, m_big, target_block_bytes=64 * 1024))
    ref_big = x_big - m_big.reshape(1, 3, 1, 1)
    assert jnp.allclose(out_big, ref_big, atol=1e-6), "mismatch vs reference (chunked case)"

    print("KERNEL_OK")
</pallas_src>

<mosaic_0001>
module attributes {stable_mosaic.version = 11 : i64} {
  func.func @_center_kernel(%arg0: i32, %arg1: i32, %arg2: memref<8x256xf32, #tpu.memory_space<vmem>>, %arg3: memref<8x1xf32, #tpu.memory_space<vmem>>, %arg4: memref<8x256xf32, #tpu.memory_space<vmem>>) attributes {dimension_semantics = [#tpu.dimension_semantics<parallel>, #tpu.dimension_semantics<parallel>], iteration_bounds = array<i64: 1, 1>, scalar_prefetch = 0 : i64, scratch_operands = 0 : i64, tpu.core_type = #tpu.core_type<tc>, window_params = [{transform_indices = @transform_0, window_bounds = array<i64: 8, 256>}, {transform_indices = @transform_1, window_bounds = array<i64: 8, 1>}, {transform_indices = @transform_2, window_bounds = array<i64: 8, 256>}]} {
    %c0 = arith.constant 0 : index
    %c0_0 = arith.constant 0 : index
    %0 = vector.load %arg2[%c0, %c0_0] : memref<8x256xf32, #tpu.memory_space<vmem>>, vector<8x256xf32>
    %c0_1 = arith.constant 0 : index
    %c0_2 = arith.constant 0 : index
    %1 = vector.load %arg3[%c0_1, %c0_2] : memref<8x1xf32, #tpu.memory_space<vmem>>, vector<8x1xf32>
    %2 = vector.broadcast %1 : vector<8x1xf32> to vector<8x256xf32>
    %3 = arith.subf %0, %2 : vector<8x256xf32>
    %c0_3 = arith.constant 0 : index
    %c0_4 = arith.constant 0 : index
    %4 = vector.load %arg4[%c0_3, %c0_4] : memref<8x256xf32, #tpu.memory_space<vmem>>, vector<8x256xf32>
    tpu.vector_store %arg4[%c0_3, %c0_4], %3 {strides = array<i32>} : memref<8x256xf32, #tpu.memory_space<vmem>>, vector<8x256xf32>,
    return
  }
  func.func @transform_0(%arg0: i32, %arg1: i32) -> (i32, i32) {
    %c0_i32 = arith.constant 0 : i32
    return %arg0, %arg1 : i32, i32
  }
  func.func @transform_1(%arg0: i32, %arg1: i32) -> (i32, i32) {
    %c0_i32 = arith.constant 0 : i32
    %c0_i32_0 = arith.constant 0 : i32
    return %arg0, %c0_i32 : i32, i32
  }
  func.func @transform_2(%arg0: i32, %arg1: i32) -> (i32, i32) {
    %c0_i32 = arith.constant 0 : i32
    return %arg0, %arg1 : i32, i32
  }
}

</mosaic_0001>

<bundles_post_ra>
// kernel: tile.0
= control target key start
LH: loop header
LB: loop body
LE: loop exit
PB: predicated region body
PF: predicated region fallthrough
CT: control target
= control target key end

     0   :  { %s34_s8 = smov 125   ;;  %s35_s9 = smov 126   ;;  %vm7_vm0 = vcmask 7168   ;;  %s61_s0 = inlined_call_operand.vmem [shape: f32[2,4], index: 0, kind: input, shape index: {}]   ;;  %s62_s1 = inlined_call_operand.vmem [shape: f32[8,1], index: 1, kind: output, shape index: {}]  }
   0x1   :  { %v4_v0 = vld [vmem:[%s61_s0] sm:$0x3]  ;;  %s33_s0 = smov 127  }
   0x2   :  { %5 = vst [vmem:[#allocation0] sm:$0x3] %v4_v0 }
   0x9   :  { %v9_v1 = vld [vmem:[#allocation0] sm:$0x3]  }
   0xa   :  { %v21_v2 = vld [vmem:[#allocation0] sm:$0x3]   ;;  %10 = vrot.lane.b32.xlu0 %v9_v1, %s33_s0 }
   0xb   :  { %22 = vrot.lane.b32.xlu1 %v21_v2, %s34_s8  ;;  %v15_v3 = vld [vmem:[#allocation0] sm:$0x3]  }
   0xc   :  { %v6_v4 = vld [vmem:[#allocation0] sm:$0x3]  }
   0xd   :  { %8 = vst.msk [vmem:[%s62_s1] ss:$4 sm:$0x3] %vm7_vm0, %v6_v4  }
  0x12   :  { %16 = vrot.lane.b32.xlu0 %v15_v3, %s35_s9 }
  0x7c   :  { %v11_v5 = vpop.permute.xlu0 %10  }
  0x7d   :  { %v23_v6 = vpop.permute.xlu1 %22   ;;  %27 = vst.msk [vmem:[%s62_s1 + $0x1] ss:$4 sm:$0x3] %vm7_vm0, %v11_v5  }
  0x7e   :  { %29 = vst.msk [vmem:[%s62_s1 + $0x3] ss:$4 sm:$0x3] %vm7_vm0, %v23_v6  }
  0x84   :  { %v17_v7 = vpop.permute.xlu0 %16  }
  0x85   :  { %28 = vst.msk [vmem:[%s62_s1 + $0x2] ss:$4 sm:$0x3] %vm7_vm0, %v17_v7  }

// kernel: tile.8
= control target key start
LH: loop header
LB: loop body
LE: loop exit
PB: predicated region body
PF: predicated region fallthrough
CT: control target
= control target key end

     0   :  { %2 = vsyncpa [#allocation1], 0  ;;  %s48_s8 = smov [#allocation0]   ;;  %s65_s0 = inlined_call_operand.hbm [shape: f32[4], index: 0, kind: input, shape index: {}]   ;;  %s66_s1 = inlined_call_operand.vmem [shape: f32[2,4], index: 1, kind: output, shape index: {}]  }
   0x1   :  { %s8_s0 = sshll.u32 %s65_s0, 4  ;;  %s10_s9 = sshll.u32 %s48_s8, 4  ;;  %s9_s0 = int_to_ptr.hbm [resolvable:$true] %s8_s0  ;;  %s11_s9 = int_to_ptr.vmem [resolvable:$true] %s10_s9 }
   0x2   :  { %13 = dma.hbm_to_vmem [thread:$0]  %s9_s0, 16, %s11_s9, [#allocation1]  }
   0x3   :  { %46 = dma.done.wait [#allocation1], 16  }
   0x4   :  { %47 = vsyncadd [#allocation1], 4294967280  ;;  %v18_v0 = vld [vmem:[#allocation0] ss:$0 sm:$0xff] }
   0x5   :  { %19 = vst [vmem:[%s66_s1] sm:$0x3] %v18_v0 }
   0x6   :  { %20 = vsyncpa [#allocation1], 1 }

// kernel: input_center_layer.1
= control target key start
LH: loop header
LB: loop body
LE: loop exit
PB: predicated region body
PF: predicated region fallthrough
CT: control target
= control target key end

     0   :  { %v29_v0 = vmov 0   ;;  %s60_s1 = inlined_call_operand.vmem [shape: f32[8,1], index: 1, kind: input, shape index: {}]   ;;  %s61_s0 = inlined_call_operand.vmem [shape: f32[8,256], index: 0, kind: input, shape index: {}]   ;;  %s62_s2 = inlined_call_operand.vmem [shape: f32[8,256], index: 2, kind: output, shape index: {}]  }
   0x1   :  { %28 = vset.pattern.permute.xlu0 %v29_v0  ;;  %v13_v1 = vld [vmem:[%s60_s1] sm:$0xff]  ;;  %v12_v3 = vld [vmem:[%s61_s0 + $0x8] sm:$0xff] }
   0x2   :  { %16 = vperm.xlu0 %28, %v13_v1   ;;  %v11_v2 = vld [vmem:[%s61_s0] sm:$0xff] }
  0x74   :  { %v17_v4 = vpop.permute.xlu0 %16 }
  0x75   :  { %v19_v5 = vsub.f32 %v11_v2, %v17_v4  ;;  %v20_v6 = vsub.f32 %v12_v3, %v17_v4 }
  0x77   :  { %21 = vst [vmem:[%s62_s2] sm:$0xff] %v19_v5 }
  0x78   :  { %22 = vst [vmem:[%s62_s2 + $0x8] sm:$0xff] %v20_v6 }

</bundles_post_ra>
